<compile_context>
chip_gen: v7x
topology: tpu7x:2x2x1
jax: 0.10.0
libtpu: 0.0.40
codegen_flags: <defaults>
</compile_context>

<pallas_src>
import functools
import math

import jax
import jax.numpy as jnp
from jax.experimental import pallas as pl
from jax.experimental.pallas import tpu as pltpu


# --------------------------------------------------------------------------- #
# Kernel
# --------------------------------------------------------------------------- #
def _upconv_kernel(x_ref, w_ref, b_ref, o_ref):
    """One fused MXU matmul + tap-structured store.

    x_ref: (TM, Cin)            native x dtype (cast to compute dtype here)
    w_ref: (Cin, 4*Cout)        compute dtype, [ci, ki*2*Cout + kj*Cout + co]
    b_ref: (1, 4*Cout)          float32,       [ki*2*Cout + kj*Cout + co]
    o_ref: (TH, 2, W, 2*Cout)   [h_local, ki, w, kj*Cout + co]
    """
    th, _, wdim, c2 = o_ref.shape
    x = x_ref[...].astype(w_ref.dtype)          # in-kernel cast (VPU, hidden under DMA)
    acc = jnp.dot(x, w_ref[...], preferred_element_type=jnp.float32)
    acc = acc + b_ref[...]                      # single f32 bias broadcast
    # Columns [0, C2) are the ki=0 taps, [C2, 2*C2) the ki=1 taps.  The reshape
    # only splits the leading pixel-row axis -> layout-free when W % 8 == 0.
    o_ref[:, 0, :, :] = acc[:, :c2].reshape(th, wdim, c2).astype(o_ref.dtype)
    o_ref[:, 1, :, :] = acc[:, c2:].reshape(th, wdim, c2).astype(o_ref.dtype)


# --------------------------------------------------------------------------- #
# Helpers
# --------------------------------------------------------------------------- #
def _vmem_capacity_bytes():
    """Per-core VMEM capacity; conservative 64 MiB default (valid on v5e/v6e/v7x)."""
    try:
        cap = getattr(pltpu.get_tpu_info(), "vmem_capacity_bytes", None)
        if cap:
            return int(cap)
    except Exception:
        pass
    return 64 << 20


def _invariant_spec(block_shape, index_map):
    """Grid-invariant operand: single-buffer it (the block never changes, so a
    second pipeline buffer is dead VMEM).  Falls back silently if this JAX
    version's BlockSpec has no pipeline_mode."""
    try:
        return pl.BlockSpec(block_shape, index_map, pipeline_mode=pl.Buffered(1))
    except (TypeError, AttributeError):
        return pl.BlockSpec(block_shape, index_map)


def _pick_tile_rows(nh, w, per_row_bytes, fixed_bytes, vmem_budget, target_tm):
    """Pick TH input image rows per block.

    Constraints: tm = TH*W is a multiple of 8 (sublane rule on the x block)
    unless a single full block is used; the double-buffered working set fits
    `vmem_budget`; tm targets ~`target_tm` pixel rows; and when there is more
    than one program we prefer an even count (balanced v7x megacore split).
    """
    step = 8 // math.gcd(w, 8)                            # TH granularity for tm % 8 == 0
    budget_rows = max(0, vmem_budget - fixed_bytes) // max(per_row_bytes, 1)
    th_cap = min(nh, max(1, target_tm // max(w, 1)), max(budget_rows, 0))
    th = (th_cap // step) * step
    if th <= 0:
        # Cannot satisfy the sublane rule within budget; a single full block is
        # always layout-legal (block dim == array dim).
        # TODO(synk): pad N*H*W to a multiple of 8 in the wrapper so huge-weight
        # configs degrade gracefully instead of risking the VMEM limit here.
        return nh
    g = -(-nh // th)
    if g > 1 and g % 2 == 1:
        # Try to make the program count even without shrinking tiles much.
        for th2 in range(th, 0, -step):
            g2 = -(-nh // th2)
            if g2 % 2 == 0:
                if g2 <= g + 3:
                    th = th2
                break
    return th


# --------------------------------------------------------------------------- #
# Wrappers
# --------------------------------------------------------------------------- #
def up_conv_forward_nhwc(x_nhwc, weight, bias, *, compute_dtype=None,
                         out_dtype=None, target_tm=4096):
    """Zero-layout-pass fast path: NHWC in, NHWC out.

    x_nhwc: (N, H, W, Cin)
    weight: (Cin, Cout, 2, 2)   PyTorch ConvTranspose2d weight layout
    bias:   (Cout,)
    returns (N, 2H, 2W, Cout) in `out_dtype` (default: x dtype).
    """
    N, H, W, Cin = x_nhwc.shape
    Cin_w, Cout, KH, KW = weight.shape
    assert Cin_w == Cin and (KH, KW) == (2, 2)
    if compute_dtype is None:
        compute_dtype = x_nhwc.dtype            # on v5e prefer jnp.bfloat16 (native MXU)
    if out_dtype is None:
        out_dtype = x_nhwc.dtype

    C2, C4 = 2 * Cout, 4 * Cout
    NH, M = N * H, N * H * W

    # Tiny layout-only parameter prep; x reshape is a free row-major view
    # (deliberately NO astype of x here -> cast happens in-kernel).
    w4 = jnp.transpose(weight, (0, 2, 3, 1)).reshape(Cin, C4).astype(compute_dtype)
    b4 = jnp.tile(bias, 4).reshape(1, C4).astype(jnp.float32)
    x2 = x_nhwc.reshape(M, Cin)

    x_item = jnp.dtype(x_nhwc.dtype).itemsize
    w_item = jnp.dtype(compute_dtype).itemsize
    o_item = jnp.dtype(out_dtype).itemsize

    vmem_cap = _vmem_capacity_bytes()
    # Working-set accounting (conservative: 2x the params even though they are
    # requested single-buffered, plus an f32 accumulator slab per row).
    fixed = 2 * (Cin * C4 * w_item + C4 * 4)
    per_row = W * (2 * Cin * x_item + 2 * C4 * o_item + C4 * 4)   # per TH unit

    th = _pick_tile_rows(NH, W, per_row, fixed, int(vmem_cap * 0.45), target_tm)
    tm = th * W
    grid = (pl.cdiv(NH, th),)

    need = fixed + th * per_row
    vmem_limit = int(min(max(int(need * 1.25) + (2 << 20), 32 << 20),
                         int(vmem_cap * 0.85)))                   # never above core VMEM

    flops = 2 * M * Cin * C4
    bytes_accessed = int(M * Cin * x_item + Cin * C4 * w_item + C4 * 4
                         + M * C4 * o_item)

    out = pl.pallas_call(
        _upconv_kernel,
        out_shape=jax.ShapeDtypeStruct((NH, 2, W, C2), out_dtype),
        grid_spec=pltpu.PrefetchScalarGridSpec(
            num_scalar_prefetch=0,
            grid=grid,
            in_specs=[
                pl.BlockSpec((tm, Cin), lambda i: (i, 0)),
                _invariant_spec((Cin, C4), lambda i: (0, 0)),
                _invariant_spec((1, C4), lambda i: (0, 0)),
            ],
            out_specs=pl.BlockSpec((th, 2, W, C2), lambda i: (i, 0, 0, 0)),
        ),
        compiler_params=pltpu.CompilerParams(
            dimension_semantics=("parallel",),
            vmem_limit_bytes=vmem_limit,
        ),
        cost_estimate=pl.CostEstimate(
            flops=flops, transcendentals=0, bytes_accessed=bytes_accessed),
    )(x2, w4, b4)

    # (N*H, 2, W, 2*Cout) row-major == (N, H, 2, W, 2, Cout) == (N, 2H, 2W, Cout).
    return out.reshape(N, 2 * H, 2 * W, Cout)


@functools.partial(jax.jit, static_argnames=("compute_dtype", "out_dtype"))
def up_conv_forward(x, weight, bias, *, compute_dtype=None, out_dtype=None):
    """PyTorch-parity forward: ConvTranspose2d(k=2, s=2, p=0), NCHW in/out.

    The two transposes are only NCHW<->NHWC boundary conversions; callers that
    keep the surrounding model NHWC should use up_conv_forward_nhwc directly
    (zero layout passes, ~3x less total HBM traffic).
    # TODO(synk): optionally fold the output NHWC->NCHW transpose into the
    # kernel via an NCHW-blocked out_spec + in-kernel XLU transpose.
    """
    x_nhwc = jnp.transpose(x, (0, 2, 3, 1))
    y_nhwc = up_conv_forward_nhwc(x_nhwc, weight, bias,
                                  compute_dtype=compute_dtype,
                                  out_dtype=out_dtype)
    return jnp.transpose(y_nhwc, (0, 3, 1, 2))


# --------------------------------------------------------------------------- #
# Reference + self-test
# --------------------------------------------------------------------------- #
def _reference_up_conv(x, weight, bias):
    # Pure-JAX reference of ConvTranspose2d(k=2, s=2, p=0) via the closed form.
    N, Cin, H, W = x.shape
    Cout = weight.shape[1]
    y = jnp.einsum("ncij,cokl->noikjl", x, weight)          # (N, Cout, H, 2, W, 2)
    return y.reshape(N, Cout, 2 * H, 2 * W) + bias[None, :, None, None]


if __name__ == "__main__":
    key = jax.random.PRNGKey(0)
    k_x, k_w, k_b = jax.random.split(key, 3)

    N, Cin, Cout, H, W = 2, 4, 2, 16, 16

    x = jax.random.normal(k_x, (N, Cin, H, W), dtype=jnp.float32)
    # Deterministic synthetic params (shapes match nn.ConvTranspose2d(Cin, Cout, 2, 2)).
    bound = 1.0 / (Cin * 2 * 2) ** 0.5
    weight = jax.random.uniform(k_w, (Cin, Cout, 2, 2), dtype=jnp.float32,
                                minval=-bound, maxval=bound)
    bias = jax.random.uniform(k_b, (Cout,), dtype=jnp.float32,
                              minval=-bound, maxval=bound)

    y_ref = _reference_up_conv(x, weight, bias)

    # f32 path (tight tolerance).
    y = jax.block_until_ready(up_conv_forward(x, weight, bias))
    assert y.shape == (N, Cout, 2 * H, 2 * W), y.shape
    assert jnp.allclose(y, y_ref, atol=1e-5, rtol=1e-5)

    # bf16 compute path: x cast in-kernel, f32 MXU accumulation, f32 bias/out.
    y_bf = jax.block_until_ready(
        up_conv_forward(x, weight, bias, compute_dtype=jnp.bfloat16))
    assert y_bf.shape == (N, Cout, 2 * H, 2 * W), y_bf.shape
    assert jnp.allclose(y_bf, y_ref, atol=3e-2, rtol=3e-2)

    # bf16 output path (halves the dominant output HBM traffic downstream).
    y_bf_out = jax.block_until_ready(
        up_conv_forward(x, weight, bias, compute_dtype=jnp.bfloat16,
                        out_dtype=jnp.bfloat16))
    assert y_bf_out.dtype == jnp.bfloat16
    assert jnp.allclose(y_bf_out.astype(jnp.float32), y_ref, atol=5e-2, rtol=5e-2)

    print("KERNEL_OK")
</pallas_src>

<mosaic_0001>
module attributes {stable_mosaic.version = 11 : i64} {
  func.func @_upconv_kernel(%arg0: i32, %arg1: memref<512x4xf32, #tpu.memory_space<vmem>>, %arg2: memref<4x8xf32, #tpu.memory_space<vmem>>, %arg3: memref<1x8xf32, #tpu.memory_space<vmem>>, %arg4: memref<32x2x16x4xf32, #tpu.memory_space<vmem>>) attributes {dimension_semantics = [#tpu.dimension_semantics<parallel>], iteration_bounds = array<i64: 1>, scalar_prefetch = 0 : i64, scratch_operands = 0 : i64, tpu.core_type = #tpu.core_type<tc>, window_params = [{transform_indices = @transform_0, window_bounds = array<i64: 512, 4>}, {pipeline_mode = #tpu.pipeline_mode<synchronous>, transform_indices = @transform_1, window_bounds = array<i64: 4, 8>}, {pipeline_mode = #tpu.pipeline_mode<synchronous>, transform_indices = @transform_2, window_bounds = array<i64: 1, 8>}, {transform_indices = @transform_3, window_bounds = array<i64: 32, 2, 16, 4>}]} {
    %c0 = arith.constant 0 : index
    %c0_0 = arith.constant 0 : index
    %0 = vector.load %arg1[%c0, %c0_0] : memref<512x4xf32, #tpu.memory_space<vmem>>, vector<512x4xf32>
    %c0_1 = arith.constant 0 : index
    %c0_2 = arith.constant 0 : index
    %1 = vector.load %arg2[%c0_1, %c0_2] : memref<4x8xf32, #tpu.memory_space<vmem>>, vector<4x8xf32>
    %cst = arith.constant dense<0.000000e+00> : vector<512x8xf32>
    %2 = tpu.matmul %0, %1, %cst {dimension_numbers = #tpu.dot_dimension_numbers<[1], [0], [0], [1], [0, 0, 1, 1], [], []>} : vector<512x4xf32>, vector<4x8xf32>, vector<512x8xf32> -> vector<512x8xf32>
    %c0_3 = arith.constant 0 : index
    %c0_4 = arith.constant 0 : index
    %3 = vector.load %arg3[%c0_3, %c0_4] : memref<1x8xf32, #tpu.memory_space<vmem>>, vector<1x8xf32>
    %4 = vector.broadcast %3 : vector<1x8xf32> to vector<512x8xf32>
    %5 = arith.addf %2, %4 : vector<512x8xf32>
    %6 = vector.extract_strided_slice %5 {offsets = [0, 0], sizes = [512, 4], strides = [1, 1]} : vector<512x8xf32> to vector<512x4xf32>
    %7 = vector.shape_cast %6 : vector<512x4xf32> to vector<32x16x4xf32>
    %c0_5 = arith.constant 0 : index
    %c0_6 = arith.constant 0 : index
    %c0_7 = arith.constant 0 : index
    %c0_8 = arith.constant 0 : index
    %8 = vector.load %arg4[%c0_5, %c0_6, %c0_7, %c0_8] : memref<32x2x16x4xf32, #tpu.memory_space<vmem>>, vector<32x1x16x4xf32>
    %9 = vector.shape_cast %8 : vector<32x1x16x4xf32> to vector<32x16x4xf32>
    %10 = vector.shape_cast %7 : vector<32x16x4xf32> to vector<32x1x16x4xf32>
    tpu.vector_store %arg4[%c0_5, %c0_6, %c0_7, %c0_8], %10 {strides = array<i32>} : memref<32x2x16x4xf32, #tpu.memory_space<vmem>>, vector<32x1x16x4xf32>,
    %11 = vector.extract_strided_slice %5 {offsets = [0, 4], sizes = [512, 4], strides = [1, 1]} : vector<512x8xf32> to vector<512x4xf32>
    %12 = vector.shape_cast %11 : vector<512x4xf32> to vector<32x16x4xf32>
    %c0_9 = arith.constant 0 : index
    %c1 = arith.constant 1 : index
    %c0_10 = arith.constant 0 : index
    %c0_11 = arith.constant 0 : index
    %13 = vector.load %arg4[%c0_9, %c1, %c0_10, %c0_11] : memref<32x2x16x4xf32, #tpu.memory_space<vmem>>, vector<32x1x16x4xf32>
    %14 = vector.shape_cast %13 : vector<32x1x16x4xf32> to vector<32x16x4xf32>
    %15 = vector.shape_cast %12 : vector<32x16x4xf32> to vector<32x1x16x4xf32>
    tpu.vector_store %arg4[%c0_9, %c1, %c0_10, %c0_11], %15 {strides = array<i32>} : memref<32x2x16x4xf32, #tpu.memory_space<vmem>>, vector<32x1x16x4xf32>,
    return
  }
  func.func @transform_0(%arg0: i32) -> (i32, i32) {
    %c0_i32 = arith.constant 0 : i32
    %c0_i32_0 = arith.constant 0 : i32
    return %arg0, %c0_i32 : i32, i32
  }
  func.func @transform_1(%arg0: i32) -> (i32, i32) {
    %c0_i32 = arith.constant 0 : i32
    %c0_i32_0 = arith.constant 0 : i32
    %c0_i32_1 = arith.constant 0 : i32
    return %c0_i32, %c0_i32_0 : i32, i32
  }
  func.func @transform_2(%arg0: i32) -> (i32, i32) {
    %c0_i32 = arith.constant 0 : i32
    %c0_i32_0 = arith.constant 0 : i32
    %c0_i32_1 = arith.constant 0 : i32
    return %c0_i32, %c0_i32_0 : i32, i32
  }
  func.func @transform_3(%arg0: i32) -> (i32, i32, i32, i32) {
    %c0_i32 = arith.constant 0 : i32
    %c0_i32_0 = arith.constant 0 : i32
    %c0_i32_1 = arith.constant 0 : i32
    %c0_i32_2 = arith.constant 0 : i32
    return %arg0, %c0_i32, %c0_i32_0, %c0_i32_1 : i32, i32, i32, i32
  }
}

</mosaic_0001>

<bundles_post_ra>
// kernel: tile.8
= control target key start
LH: loop header
LB: loop body
LE: loop exit
PB: predicated region body
PF: predicated region fallthrough
CT: control target
= control target key end

     0   :  { %s22_s0 = inlined_call_operand.vmem [shape: f32[2], index: 0, kind: input, shape index: {}]   ;;  %s23_s1 = inlined_call_operand.vmem [shape: f32[4,2], index: 1, kind: output, shape index: {}]  }
   0x1   :  { %v4_v0 = vld [vmem:[%s22_s0] ss:$0 sm:$0xff] }
   0x2   :  { %5 = vst [vmem:[%s23_s1] sm:$0xf] %v4_v0 }

// kernel: tile.9
= control target key start
LH: loop header
LB: loop body
LE: loop exit
PB: predicated region body
PF: predicated region fallthrough
CT: control target
= control target key end

     0   :  { %vm7_vm0 = vcmask 15360   ;;  %s37_s8 = smov 2   ;;  %s38_s9 = smov 4   ;;  %vm13_vm1 = vcmask 64560   ;;  %vm19_vm2 = vcmask 48160   ;;  %vm25_vm3 = vcmask 31760   ;;  %s55_s0 = inlined_call_operand.vmem [shape: f32[4,2], index: 0, kind: input, shape index: {}]   ;;  %s56_s1 = inlined_call_operand.vmem [shape: f32[1,8], index: 1, kind: output, shape index: {}]  }
   0x1   :  { %v4_v0 = vld [vmem:[%s55_s0] sm:$0xf]  ;;  %s36_s0 = smov 6  }
   0x2   :  { %5 = vst [vmem:[#allocation1] sm:$0xf] %v4_v0 }
   0x9   :  { %v10_v1 = vld [vmem:[#allocation1 + $0x3] sm:$0x1]   ;;  %v22_v2 = vld [vmem:[#allocation1 + $0x1] sm:$0x1]   ;;  %v6_v3 = vld [vmem:[#allocation1] sm:$0x1]  }
   0xa   :  { %11 = vrot.lane.b32.xlu0 %v10_v1, %s36_s0  ;;  %23 = vrot.lane.b32.xlu1 %v22_v2, %s37_s8  ;;  %v16_v4 = vld [vmem:[#allocation1 + $0x2] sm:$0x1]   ;;  %8 = vst.msk [vmem:[#allocation0] sm:$0x1] %vm7_vm0, %v6_v3  }
   0xe   :  { %17 = vrot.lane.b32.xlu0 %v16_v4, %s38_s9 }
  0x7c   :  { %v12_v5 = vpop.permute.xlu0 %11   ;;  %v24_v6 = vpop.permute.xlu1 %23  }
  0x7d   :  { %14 = vst.msk [vmem:[#allocation0] sm:$0x1] %vm13_vm1, %v12_v5  }
  0x80   :  { %v18_v7 = vpop.permute.xlu0 %17  }
  0x81   :  { %20 = vst.msk [vmem:[#allocation0] sm:$0x1] %vm19_vm2, %v18_v7  }
  0x82   :  { %26 = vst.msk [vmem:[#allocation0] sm:$0x1] %vm25_vm3, %v24_v6  }
  0x89   :  { %v30_v8 = vld [vmem:[#allocation0] sm:$0x1] }
  0x8a   :  { %32 = vst [vmem:[%s56_s1] sm:$0x1] %v30_v8 }

// kernel: up_conv_forward.1
= control target key start
LH: loop header
LB: loop body
LE: loop exit
PB: predicated region body
PF: predicated region fallthrough
CT: control target
= control target key end

     0   :  { %vm279_vm0 = vcmask 1043456   ;;  %vm86_vm1 = vcmask 31744   ;;  %s1353_s6 = smov 124   ;;  %s2414_s1 = inlined_call_operand.vmem [shape: f32[4,8], index: 1, kind: input, shape index: {}]   ;;  %s2415_s0 = inlined_call_operand.vmem [shape: f32[512,4], index: 0, kind: input, shape index: {}]   ;;  %s2416_s2 = inlined_call_operand.vmem [shape: f32[1,8], index: 2, kind: input, shape index: {}]   ;;  %s2417_s3 = inlined_call_operand.vmem [shape: f32[32,2,16,4], index: 3, kind: output, shape index: {}]  }
   0x1   :  { %v78_v0 = vld [vmem:[%s2414_s1] sm:$0xf]  ;;  %v15_v3 = vld [vmem:[%s2415_s0 + $0x8] sm:$0xff]  ;;  %v16_v5 = vld [vmem:[%s2415_s0 + $0x10] sm:$0xff] }
   0x2   :  { %v14_v1 = vld [vmem:[%s2415_s0] sm:$0xff]  ;;  %1252 = vmatprep.subr.msk.mxu0 %vm279_vm0, %v78_v0  ;;  %1350 = vmatprep.subr.msk.mxu1 %vm279_vm0, %v78_v0  ;;  %v47_v4 = vld [vmem:[%s2415_s0 + $0x108] sm:$0xff]  ;;  %v48_v6 = vld [vmem:[%s2415_s0 + $0x110] sm:$0xff] }
   0x3   :  { %v46_v2 = vld [vmem:[%s2415_s0 + $0x100] sm:$0xff]  ;;  %1253 = vmatpush3.msk.msra.mxu0 %vm279_vm0, %v78_v0  ;;  %1351 = vmatpush3.msk.msra.mxu1 %vm279_vm0, %v78_v0  ;;  %v17_v7 = vld [vmem:[%s2415_s0 + $0x18] sm:$0xff]  ;;  %v19_v11 = vld [vmem:[%s2415_s0 + $0x28] sm:$0xff] }
   0x4   :  { %1254 = vmatprep.mubr.msk.f32.mxu0 %vm86_vm1, %v14_v1  ;;  %1302 = vmatprep.mubr.msk.f32.mxu1 %vm86_vm1, %v46_v2  ;;  %v49_v8 = vld [vmem:[%s2415_s0 + $0x118] sm:$0xff]  ;;  %v18_v9 = vld [vmem:[%s2415_s0 + $0x20] sm:$0xff]  ;;  %v51_v12 = vld [vmem:[%s2415_s0 + $0x128] sm:$0xff] }
   0x5   :  { %1255 = vmatmul.mubr.msk.f32.vlgmr.msra.gmra.mrb[0].mxu0 %vm86_vm1, %v15_v3  ;;  %1303 = vmatmul.mubr.msk.f32.vlgmr.msra.gmra.mrb[0].mxu1 %vm86_vm1, %v47_v4  ;;  %v50_v10 = vld [vmem:[%s2415_s0 + $0x120] sm:$0xff]  ;;  %v20_v13 = vld [vmem:[%s2415_s0 + $0x30] sm:$0xff]  ;;  %v21_v15 = vld [vmem:[%s2415_s0 + $0x38] sm:$0xff] }
   0x6   :  { %1257 = vmatprep.mubr.msk.f32.mxu0 %vm86_vm1, %v16_v5  ;;  %1305 = vmatprep.mubr.msk.f32.mxu1 %vm86_vm1, %v48_v6  ;;  %v52_v14 = vld [vmem:[%s2415_s0 + $0x130] sm:$0xff]  ;;  %v53_v16 = vld [vmem:[%s2415_s0 + $0x138] sm:$0xff]  ;;  %v22_v17 = vld [vmem:[%s2415_s0 + $0x40] sm:$0xff] }
   0x7   :  { %v54_v18 = vld [vmem:[%s2415_s0 + $0x140] sm:$0xff]  ;;  %v23_v19 = vld [vmem:[%s2415_s0 + $0x48] sm:$0xff]  ;;  %v24_v21 = vld [vmem:[%s2415_s0 + $0x50] sm:$0xff] }
   0x8   :  { %v55_v20 = vld [vmem:[%s2415_s0 + $0x148] sm:$0xff]  ;;  %v56_v22 = vld [vmem:[%s2415_s0 + $0x150] sm:$0xff]  ;;  %v25_v23 = vld [vmem:[%s2415_s0 + $0x58] sm:$0xff] }
   0x9   :  { %1258 = vmatmul.mubr.msk.f32.gmra.mrb[2].mxu0 %vm86_vm1, %v17_v7  ;;  %1306 = vmatmul.mubr.msk.f32.gmra.mrb[2].mxu1 %vm86_vm1, %v49_v8  ;;  %v57_v24 = vld [vmem:[%s2415_s0 + $0x158] sm:$0xff]  ;;  %v26_v25 = vld [vmem:[%s2415_s0 + $0x60] sm:$0xff]  ;;  %v27_v27 = vld [vmem:[%s2415_s0 + $0x68] sm:$0xff] }
   0xa   :  { %1260 = vmatprep.mubr.msk.f32.mxu0 %vm86_vm1, %v18_v9  ;;  %1308 = vmatprep.mubr.msk.f32.mxu1 %vm86_vm1, %v50_v10  ;;  %v58_v26 = vld [vmem:[%s2415_s0 + $0x160] sm:$0xff]  ;;  %v59_v28 = vld [vmem:[%s2415_s0 + $0x168] sm:$0xff]  ;;  %v28_v29 = vld [vmem:[%s2415_s0 + $0x70] sm:$0xff] }
   0xb   :  { %v60_v30 = vld [vmem:[%s2415_s0 + $0x170] sm:$0xff]  ;;  %v29_v31 = vld [vmem:[%s2415_s0 + $0x78] sm:$0xff]  ;;  %v30_v33 = vld [vmem:[%s2415_s0 + $0x80] sm:$0xff] }
   0xc   :  { %v61_v32 = vld [vmem:[%s2415_s0 + $0x178] sm:$0xff]  ;;  %v62_v34 = vld [vmem:[%s2415_s0 + $0x180] sm:$0xff]  ;;  %v31_v35 = vld [vmem:[%s2415_s0 + $0x88] sm:$0xff] }
   0xd   :  { %1261 = vmatmul.mubr.msk.f32.gmra.mrb[4].mxu0 %vm86_vm1, %v19_v11  ;;  %1309 = vmatmul.mubr.msk.f32.gmra.mrb[4].mxu1 %vm86_vm1, %v51_v12  ;;  %v63_v36 = vld [vmem:[%s2415_s0 + $0x188] sm:$0xff]  ;;  %v32_v37 = vld [vmem:[%s2415_s0 + $0x90] sm:$0xff]  ;;  %v33_v39 = vld [vmem:[%s2415_s0 + $0x98] sm:$0xff] }
   0xe   :  { %1263 = vmatprep.mubr.msk.f32.mxu0 %vm86_vm1, %v20_v13  ;;  %1311 = vmatprep.mubr.msk.f32.mxu1 %vm86_vm1, %v52_v14  ;;  %v64_v38 = vld [vmem:[%s2415_s0 + $0x190] sm:$0xff]  ;;  %v65_v40 = vld [vmem:[%s2415_s0 + $0x198] sm:$0xff]  ;;  %v34_v41 = vld [vmem:[%s2415_s0 + $0xa0] sm:$0xff] }
   0xf   :  { %v66_v42 = vld [vmem:[%s2415_s0 + $0x1a0] sm:$0xff]  ;;  %v35_v43 = vld [vmem:[%s2415_s0 + $0xa8] sm:$0xff]  ;;  %v36_v45 = vld [vmem:[%s2415_s0 + $0xb0] sm:$0xff] }
  0x10   :  { %v67_v44 = vld [vmem:[%s2415_s0 + $0x1a8] sm:$0xff]  ;;  %v68_v46 = vld [vmem:[%s2415_s0 + $0x1b0] sm:$0xff]  ;;  %v37_v47 = vld [vmem:[%s2415_s0 + $0xb8] sm:$0xff] }
  0x11   :  { %1264 = vmatmul.mubr.msk.f32.gmra.mrb[6].mxu0 %vm86_vm1, %v21_v15  ;;  %1312 = vmatmul.mubr.msk.f32.gmra.mrb[6].mxu1 %vm86_vm1, %v53_v16  ;;  %v69_v48 = vld [vmem:[%s2415_s0 + $0x1b8] sm:$0xff]  ;;  %v38_v49 = vld [vmem:[%s2415_s0 + $0xc0] sm:$0xff]  ;;  %v39_v51 = vld [vmem:[%s2415_s0 + $0xc8] sm:$0xff] }
  0x12   :  { %1266 = vmatprep.mubr.msk.f32.mxu0 %vm86_vm1, %v22_v17  ;;  %1314 = vmatprep.mubr.msk.f32.mxu1 %vm86_vm1, %v54_v18  ;;  %v70_v50 = vld [vmem:[%s2415_s0 + $0x1c0] sm:$0xff]  ;;  %v71_v52 = vld [vmem:[%s2415_s0 + $0x1c8] sm:$0xff]  ;;  %v40_v53 = vld [vmem:[%s2415_s0 + $0xd0] sm:$0xff] }
  0x13   :  { %v72_v54 = vld [vmem:[%s2415_s0 + $0x1d0] sm:$0xff]  ;;  %v41_v55 = vld [vmem:[%s2415_s0 + $0xd8] sm:$0xff]  ;;  %v42_v57 = vld [vmem:[%s2415_s0 + $0xe0] sm:$0xff] }
  0x14   :  { %v73_v56 = vld [vmem:[%s2415_s0 + $0x1d8] sm:$0xff]  ;;  %v74_v58 = vld [vmem:[%s2415_s0 + $0x1e0] sm:$0xff]  ;;  %v43_v59 = vld [vmem:[%s2415_s0 + $0xe8] sm:$0xff] }
  0x15   :  { %1267 = vmatmul.mubr.msk.f32.gmra.mrb[8].mxu0 %vm86_vm1, %v23_v19  ;;  %1315 = vmatmul.mubr.msk.f32.gmra.mrb[8].mxu1 %vm86_vm1, %v55_v20  ;;  %v75_v60 = vld [vmem:[%s2415_s0 + $0x1e8] sm:$0xff]  ;;  %v44_v61 = vld [vmem:[%s2415_s0 + $0xf0] sm:$0xff]  ;;  %v45_v63 = vld [vmem:[%s2415_s0 + $0xf8] sm:$0xff] }
  0x16   :  { %1269 = vmatprep.mubr.msk.f32.mxu0 %vm86_vm1, %v24_v21  ;;  %1317 = vmatprep.mubr.msk.f32.mxu1 %vm86_vm1, %v56_v22  ;;  %v76_v62 = vld [vmem:[%s2415_s0 + $0x1f0] sm:$0xff]  ;;  %v77_v0 = vld [vmem:[%s2415_s0 + $0x1f8] sm:$0xff]  ;;  %v1636_v1 = vld [vmem:[%s2416_s2] ss:$0 sm:$0xff] }
  0x19   :  { %1270 = vmatmul.mubr.msk.f32.gmra.mrb[10].mxu0 %vm86_vm1, %v25_v23  ;;  %1318 = vmatmul.mubr.msk.f32.gmra.mrb[10].mxu1 %vm86_vm1, %v57_v24 }
  0x1a   :  { %1272 = vmatprep.mubr.msk.f32.mxu0 %vm86_vm1, %v26_v25  ;;  %1320 = vmatprep.mubr.msk.f32.mxu1 %vm86_vm1, %v58_v26 }
  0x1d   :  { %1273 = vmatmul.mubr.msk.f32.gmra.mrb[12].mxu0 %vm86_vm1, %v27_v27  ;;  %1321 = vmatmul.mubr.msk.f32.gmra.mrb[12].mxu1 %vm86_vm1, %v59_v28 }
  0x1e   :  { %1275 = vmatprep.mubr.msk.f32.mxu0 %vm86_vm1, %v28_v29  ;;  %1323 = vmatprep.mubr.msk.f32.mxu1 %vm86_vm1, %v60_v30 }
  0x21   :  { %1276 = vmatmul.mubr.msk.f32.gmra.mrb[14].mxu0 %vm86_vm1, %v29_v31  ;;  %1324 = vmatmul.mubr.msk.f32.gmra.mrb[14].mxu1 %vm86_vm1, %v61_v32 }
  0x22   :  { %1278 = vmatprep.mubr.msk.f32.mxu0 %vm86_vm1, %v30_v33  ;;  %1326 = vmatprep.mubr.msk.f32.mxu1 %vm86_vm1, %v62_v34 }
  0x25   :  { %1279 = vmatmul.mubr.msk.f32.gmra.mrb[16].mxu0 %vm86_vm1, %v31_v35  ;;  %1327 = vmatmul.mubr.msk.f32.gmra.mrb[16].mxu1 %vm86_vm1, %v63_v36 }
  0x26   :  { %1281 = vmatprep.mubr.msk.f32.mxu0 %vm86_vm1, %v32_v37  ;;  %1329 = vmatprep.mubr.msk.f32.mxu1 %vm86_vm1, %v64_v38 }
  0x29   :  { %1282 = vmatmul.mubr.msk.f32.gmra.mrb[18].mxu0 %vm86_vm1, %v33_v39  ;;  %1330 = vmatmul.mubr.msk.f32.gmra.mrb[18].mxu1 %vm86_vm1, %v65_v40 }
  0x2a   :  { %1284 = vmatprep.mubr.msk.f32.mxu0 %vm86_vm1, %v34_v41  ;;  %1332 = vmatprep.mubr.msk.f32.mxu1 %vm86_vm1, %v66_v42 }
  0x2d   :  { %1285 = vmatmul.mubr.msk.f32.gmra.mrb[20].mxu0 %vm86_vm1, %v35_v43  ;;  %1333 = vmatmul.mubr.msk.f32.gmra.mrb[20].mxu1 %vm86_vm1, %v67_v44 }
  0x2e   :  { %1287 = vmatprep.mubr.msk.f32.mxu0 %vm86_vm1, %v36_v45  ;;  %1335 = vmatprep.mubr.msk.f32.mxu1 %vm86_vm1, %v68_v46 }
  0x31   :  { %1288 = vmatmul.mubr.msk.f32.gmra.mrb[22].mxu0 %vm86_vm1, %v37_v47  ;;  %1336 = vmatmul.mubr.msk.f32.gmra.mrb[22].mxu1 %vm86_vm1, %v69_v48 }
  0x32   :  { %1290 = vmatprep.mubr.msk.f32.mxu0 %vm86_vm1, %v38_v49  ;;  %1338 = vmatprep.mubr.msk.f32.mxu1 %vm86_vm1, %v70_v50 }
  0x35   :  { %1291 = vmatmul.mubr.msk.f32.gmra.mrb[24].mxu0 %vm86_vm1, %v39_v51  ;;  %1339 = vmatmul.mubr.msk.f32.gmra.mrb[24].mxu1 %vm86_vm1, %v71_v52 }
  0x36   :  { %1293 = vmatprep.mubr.msk.f32.mxu0 %vm86_vm1, %v40_v53  ;;  %1341 = vmatprep.mubr.msk.f32.mxu1 %vm86_vm1, %v72_v54 }
  0x39   :  { %1294 = vmatmul.mubr.msk.f32.gmra.mrb[26].mxu0 %vm86_vm1, %v41_v55  ;;  %1342 = vmatmul.mubr.msk.f32.gmra.mrb[26].mxu1 %vm86_vm1, %v73_v56 }
  0x3a   :  { %1296 = vmatprep.mubr.msk.f32.mxu0 %vm86_vm1, %v42_v57  ;;  %1344 = vmatprep.mubr.msk.f32.mxu1 %vm86_vm1, %v74_v58 }
  0x3d   :  { %1297 = vmatmul.mubr.msk.f32.gmra.mrb[28].mxu0 %vm86_vm1, %v43_v59  ;;  %1345 = vmatmul.mubr.msk.f32.gmra.mrb[28].mxu1 %vm86_vm1, %v75_v60 }
  0x3e   :  { %1299 = vmatprep.mubr.msk.f32.mxu0 %vm86_vm1, %v44_v61  ;;  %1347 = vmatprep.mubr.msk.f32.mxu1 %vm86_vm1, %v76_v62 }
  0x41   :  { %1300 = vmatmul.mubr.msk.f32.gmra.mrb[30].mxu0 %vm86_vm1, %v45_v63  ;;  %1348 = vmatmul.mubr.msk.f32.gmra.mrb[30].mxu1 %vm86_vm1, %v77_v0 }
  0xd8   :  { %v1256_v2 = vpop.f32.mrb[0].mxu0  ;;  %v1304_v3 = vpop.f32.mrb[0].mxu1 }
  0xd9   :  { %v355_v4 = vadd.f32 %v1256_v2, %v1636_v1  ;;  %v515_v5 = vadd.f32 %v1304_v3, %v1636_v1  ;;  %v349_v6 = vpop.f32.mrb[1].mxu0  ;;  %v509_v7 = vpop.f32.mrb[1].mxu1 }
  0xda   :  { %v350_v8 = vadd.f32 %v1636_v1, %v349_v6  ;;  %v510_v9 = vadd.f32 %v1636_v1, %v509_v7 }
  0xdb   :  { %669 = vst.msk [vmem:[%s2417_s3 + $0x8] sm:$0xff] %vm86_vm1, %v355_v4  ;;  %701 = vst.msk [vmem:[%s2417_s3 + $0x208] sm:$0xff] %vm86_vm1, %v515_v5  ;;  %862 = vrot.lane.b32.xlu1 %v515_v5, %s1353_s6  ;;  %798 = vrot.lane.b32.xlu0 %v355_v4, %s1353_s6 }
  0xdc   :  { %668 = vst.msk [vmem:[%s2417_s3] sm:$0xff] %vm86_vm1, %v350_v8  ;;  %700 = vst.msk [vmem:[%s2417_s3 + $0x200] sm:$0xff] %vm86_vm1, %v510_v9  ;;  %v1259_v10 = vpop.f32.mrb[2].mxu0  ;;  %v1307_v11 = vpop.f32.mrb[2].mxu1 }
  0xdd   :  { %v365_v12 = vadd.f32 %v1259_v10, %v1636_v1  ;;  %v359_v13 = vpop.f32.mrb[3].mxu0  ;;  %v525_v14 = vadd.f32 %v1307_v11, %v1636_v1  ;;  %v519_v15 = vpop.f32.mrb[3].mxu1 }
  0xde   :  { %v360_v16 = vadd.f32 %v1636_v1, %v359_v13  ;;  %v520_v17 = vadd.f32 %v1636_v1, %v519_v15 }
  0xdf   :  { %671 = vst.msk [vmem:[%s2417_s3 + $0x28] sm:$0xff] %vm86_vm1, %v365_v12  ;;  %703 = vst.msk [vmem:[%s2417_s3 + $0x228] sm:$0xff] %vm86_vm1, %v525_v14  ;;  %802 = vrot.lane.b32.xlu1 %v365_v12, %s1353_s6  ;;  %796 = vrot.lane.b32.xlu0 %v350_v8, %s1353_s6 }
  0xe0   :  { %670 = vst.msk [vmem:[%s2417_s3 + $0x20] sm:$0xff] %vm86_vm1, %v360_v16  ;;  %702 = vst.msk [vmem:[%s2417_s3 + $0x220] sm:$0xff] %vm86_vm1, %v520_v17  ;;  %v1262_v18 = vpop.f32.mrb[4].mxu0  ;;  %v1310_v19 = vpop.f32.mrb[4].mxu1 }
  0xe1   :  { %v375_v20 = vadd.f32 %v1262_v18, %v1636_v1  ;;  %v369_v21 = vpop.f32.mrb[5].mxu0  ;;  %v535_v22 = vadd.f32 %v1310_v19, %v1636_v1  ;;  %v529_v23 = vpop.f32.mrb[5].mxu1 }
  0xe2   :  { %v370_v24 = vadd.f32 %v1636_v1, %v369_v21  ;;  %v530_v25 = vadd.f32 %v1636_v1, %v529_v23 }
  0xe3   :  { %866 = vrot.lane.b32.xlu1 %v525_v14, %s1353_s6  ;;  %860 = vrot.lane.b32.xlu0 %v510_v9, %s1353_s6  ;;  %673 = vst.msk [vmem:[%s2417_s3 + $0x48] sm:$0xff] %vm86_vm1, %v375_v20  ;;  %705 = vst.msk [vmem:[%s2417_s3 + $0x248] sm:$0xff] %vm86_vm1, %v535_v22 }
  0xe4   :  { %672 = vst.msk [vmem:[%s2417_s3 + $0x40] sm:$0xff] %vm86_vm1, %v370_v24  ;;  %704 = vst.msk [vmem:[%s2417_s3 + $0x240] sm:$0xff] %vm86_vm1, %v530_v25  ;;  %v1265_v26 = vpop.f32.mrb[6].mxu0  ;;  %v1313_v27 = vpop.f32.mrb[6].mxu1 }
  0xe5   :  { %v385_v28 = vadd.f32 %v1265_v26, %v1636_v1  ;;  %v379_v29 = vpop.f32.mrb[7].mxu0  ;;  %v545_v30 = vadd.f32 %v1313_v27, %v1636_v1  ;;  %v539_v31 = vpop.f32.mrb[7].mxu1 }
  0xe6   :  { %v380_v32 = vadd.f32 %v1636_v1, %v379_v29  ;;  %v540_v33 = vadd.f32 %v1636_v1, %v539_v31 }
  0xe7   :  { %800 = vrot.lane.b32.xlu1 %v360_v16, %s1353_s6  ;;  %864 = vrot.lane.b32.xlu0 %v520_v17, %s1353_s6  ;;  %675 = vst.msk [vmem:[%s2417_s3 + $0x68] sm:$0xff] %vm86_vm1, %v385_v28  ;;  %707 = vst.msk [vmem:[%s2417_s3 + $0x268] sm:$0xff] %vm86_vm1, %v545_v30 }
  0xe8   :  { %674 = vst.msk [vmem:[%s2417_s3 + $0x60] sm:$0xff] %vm86_vm1, %v380_v32  ;;  %706 = vst.msk [vmem:[%s2417_s3 + $0x260] sm:$0xff] %vm86_vm1, %v540_v33  ;;  %v1268_v34 = vpop.f32.mrb[8].mxu0  ;;  %v1316_v35 = vpop.f32.mrb[8].mxu1 }
  0xe9   :  { %v395_v36 = vadd.f32 %v1268_v34, %v1636_v1  ;;  %v389_v37 = vpop.f32.mrb[9].mxu0  ;;  %v1728_v38 = vadd.f32 %v1316_v35, %v1636_v1  ;;  %v549_v39 = vpop.f32.mrb[9].mxu1 }
  0xea   :  { %v390_v40 = vadd.f32 %v1636_v1, %v389_v37  ;;  %v1732_v41 = vadd.f32 %v1636_v1, %v549_v39 }
  0xeb   :  { %806 = vrot.lane.b32.xlu1 %v375_v20, %s1353_s6  ;;  %804 = vrot.lane.b32.xlu0 %v370_v24, %s1353_s6  ;;  %677 = vst.msk [vmem:[%s2417_s3 + $0x88] sm:$0xff] %vm86_vm1, %v395_v36  ;;  %709 = vst.msk [vmem:[%s2417_s3 + $0x288] sm:$0xff] %vm86_vm1, %v1728_v38 }
  0xec   :  { %676 = vst.msk [vmem:[%s2417_s3 + $0x80] sm:$0xff] %vm86_vm1, %v390_v40  ;;  %708 = vst.msk [vmem:[%s2417_s3 + $0x280] sm:$0xff] %vm86_vm1, %v1732_v41  ;;  %v1271_v42 = vpop.f32.mrb[10].mxu0  ;;  %v1319_v43 = vpop.f32.mrb[10].mxu1 }
  0xed   :  { %v1755_v44 = vadd.f32 %v1271_v42, %v1636_v1  ;;  %v399_v45 = vpop.f32.mrb[11].mxu0  ;;  %v1758_v46 = vadd.f32 %v1319_v43, %v1636_v1  ;;  %v559_v47 = vpop.f32.mrb[11].mxu1 }
  0xee   :  { %v1761_v48 = vadd.f32 %v1636_v1, %v399_v45  ;;  %v1764_v49 = vadd.f32 %v1636_v1, %v559_v47 }
  0xef   :  { %870 = vrot.lane.b32.xlu1 %v535_v22, %s1353_s6  ;;  %868 = vrot.lane.b32.xlu0 %v530_v25, %s1353_s6  ;;  %679 = vst.msk [vmem:[%s2417_s3 + $0xa8] sm:$0xff] %vm86_vm1, %v1755_v44  ;;  %711 = vst.msk [vmem:[%s2417_s3 + $0x2a8] sm:$0xff] %vm86_vm1, %v1758_v46 }
  0xf0   :  { %678 = vst.msk [vmem:[%s2417_s3 + $0xa0] sm:$0xff] %vm86_vm1, %v1761_v48  ;;  %710 = vst.msk [vmem:[%s2417_s3 + $0x2a0] sm:$0xff] %vm86_vm1, %v1764_v49  ;;  %v1274_v50 = vpop.f32.mrb[12].mxu0  ;;  %v1322_v51 = vpop.f32.mrb[12].mxu1 }
  0xf1   :  { %v1789_v52 = vadd.f32 %v1274_v50, %v1636_v1  ;;  %v409_v53 = vpop.f32.mrb[13].mxu0  ;;  %v1792_v54 = vadd.f32 %v1322_v51, %v1636_v1  ;;  %v569_v55 = vpop.f32.mrb[13].mxu1 }
  0xf2   :  { %v1795_v56 = vadd.f32 %v1636_v1, %v409_v53  ;;  %v1798_v57 = vadd.f32 %v1636_v1, %v569_v55 }
  0xf3   :  { %810 = vrot.lane.b32.xlu1 %v385_v28, %s1353_s6  ;;  %808 = vrot.lane.b32.xlu0 %v380_v32, %s1353_s6  ;;  %681 = vst.msk [vmem:[%s2417_s3 + $0xc8] sm:$0xff] %vm86_vm1, %v1789_v52  ;;  %713 = vst.msk [vmem:[%s2417_s3 + $0x2c8] sm:$0xff] %vm86_vm1, %v1792_v54 }
  0xf4   :  { %680 = vst.msk [vmem:[%s2417_s3 + $0xc0] sm:$0xff] %vm86_vm1, %v1795_v56  ;;  %712 = vst.msk [vmem:[%s2417_s3 + $0x2c0] sm:$0xff] %vm86_vm1, %v1798_v57  ;;  %v1277_v58 = vpop.f32.mrb[14].mxu0  ;;  %v1325_v59 = vpop.f32.mrb[14].mxu1 }
  0xf5   :  { %v1823_v60 = vadd.f32 %v1277_v58, %v1636_v1  ;;  %v419_v61 = vpop.f32.mrb[15].mxu0  ;;  %v1826_v62 = vadd.f32 %v1325_v59, %v1636_v1  ;;  %v579_v63 = vpop.f32.mrb[15].mxu1 }
  0xf6   :  { %v1829_v0 = vadd.f32 %v1636_v1, %v419_v61  ;;  %v1832_v2 = vadd.f32 %v1636_v1, %v579_v63 }
  0xf7   :  { %874 = vrot.lane.b32.xlu1 %v545_v30, %s1353_s6  ;;  %872 = vrot.lane.b32.xlu0 %v540_v33, %s1353_s6  ;;  %683 = vst.msk [vmem:[%s2417_s3 + $0xe8] sm:$0xff] %vm86_vm1, %v1823_v60  ;;  %715 = vst.msk [vmem:[%s2417_s3 + $0x2e8] sm:$0xff] %vm86_vm1, %v1826_v62 }
  0xf8   :  { %682 = vst.msk [vmem:[%s2417_s3 + $0xe0] sm:$0xff] %vm86_vm1, %v1829_v0  ;;  %714 = vst.msk [vmem:[%s2417_s3 + $0x2e0] sm:$0xff] %vm86_vm1, %v1832_v2  ;;  %v1280_v3 = vpop.f32.mrb[16].mxu0  ;;  %v1328_v4 = vpop.f32.mrb[16].mxu1 }
  0xf9   :  { %v1857_v5 = vadd.f32 %v1280_v3, %v1636_v1  ;;  %v429_v6 = vpop.f32.mrb[17].mxu0  ;;  %v1860_v7 = vadd.f32 %v1328_v4, %v1636_v1  ;;  %v589_v8 = vpop.f32.mrb[17].mxu1 }
  0xfa   :  { %v1863_v9 = vadd.f32 %v1636_v1, %v429_v6  ;;  %v1866_v10 = vadd.f32 %v1636_v1, %v589_v8 }
  0xfb   :  { %814 = vrot.lane.b32.xlu1 %v395_v36, %s1353_s6  ;;  %812 = vrot.lane.b32.xlu0 %v390_v40, %s1353_s6  ;;  %685 = vst.msk [vmem:[%s2417_s3 + $0x108] sm:$0xff] %vm86_vm1, %v1857_v5  ;;  %717 = vst.msk [vmem:[%s2417_s3 + $0x308] sm:$0xff] %vm86_vm1, %v1860_v7 }
  0xfc   :  { %684 = vst.msk [vmem:[%s2417_s3 + $0x100] sm:$0xff] %vm86_vm1, %v1863_v9  ;;  %716 = vst.msk [vmem:[%s2417_s3 + $0x300] sm:$0xff] %vm86_vm1, %v1866_v10  ;;  %v1283_v11 = vpop.f32.mrb[18].mxu0  ;;  %v1331_v12 = vpop.f32.mrb[18].mxu1 }
  0xfd   :  { %v1891_v13 = vadd.f32 %v1283_v11, %v1636_v1  ;;  %v439_v14 = vpop.f32.mrb[19].mxu0  ;;  %v1894_v15 = vadd.f32 %v1331_v12, %v1636_v1  ;;  %v599_v16 = vpop.f32.mrb[19].mxu1 }
  0xfe   :  { %v1897_v17 = vadd.f32 %v1636_v1, %v439_v14  ;;  %v1900_v18 = vadd.f32 %v1636_v1, %v599_v16 }
  0xff   :  { %878 = vrot.lane.b32.xlu1 %v1728_v38, %s1353_s6  ;;  %876 = vrot.lane.b32.xlu0 %v1732_v41, %s1353_s6  ;;  %687 = vst.msk [vmem:[%s2417_s3 + $0x128] sm:$0xff] %vm86_vm1, %v1891_v13  ;;  %719 = vst.msk [vmem:[%s2417_s3 + $0x328] sm:$0xff] %vm86_vm1, %v1894_v15 }
 0x100   :  { %686 = vst.msk [vmem:[%s2417_s3 + $0x120] sm:$0xff] %vm86_vm1, %v1897_v17  ;;  %718 = vst.msk [vmem:[%s2417_s3 + $0x320] sm:$0xff] %vm86_vm1, %v1900_v18  ;;  %v1286_v19 = vpop.f32.mrb[20].mxu0  ;;  %v1334_v20 = vpop.f32.mrb[20].mxu1 }
 0x101   :  { %v1927_v21 = vadd.f32 %v1286_v19, %v1636_v1  ;;  %v449_v22 = vpop.f32.mrb[21].mxu0  ;;  %v1930_v23 = vadd.f32 %v1334_v20, %v1636_v1  ;;  %v609_v24 = vpop.f32.mrb[21].mxu1 }
 0x102   :  { %v1933_v25 = vadd.f32 %v1636_v1, %v449_v22  ;;  %v1936_v26 = vadd.f32 %v1636_v1, %v609_v24 }
 0x103   :  { %818 = vrot.lane.b32.xlu1 %v1755_v44, %s1353_s6  ;;  %816 = vrot.lane.b32.xlu0 %v1761_v48, %s1353_s6  ;;  %689 = vst.msk [vmem:[%s2417_s3 + $0x148] sm:$0xff] %vm86_vm1, %v1927_v21  ;;  %721 = vst.msk [vmem:[%s2417_s3 + $0x348] sm:$0xff] %vm86_vm1, %v1930_v23 }
 0x104   :  { %688 = vst.msk [vmem:[%s2417_s3 + $0x140] sm:$0xff] %vm86_vm1, %v1933_v25  ;;  %720 = vst.msk [vmem:[%s2417_s3 + $0x340] sm:$0xff] %vm86_vm1, %v1936_v26  ;;  %v1289_v27 = vpop.f32.mrb[22].mxu0  ;;  %v1337_v28 = vpop.f32.mrb[22].mxu1 }
 0x105   :  { %v1963_v29 = vadd.f32 %v1289_v27, %v1636_v1  ;;  %v459_v30 = vpop.f32.mrb[23].mxu0  ;;  %v1966_v31 = vadd.f32 %v1337_v28, %v1636_v1  ;;  %v619_v32 = vpop.f32.mrb[23].mxu1 }
 0x106   :  { %v1969_v33 = vadd.f32 %v1636_v1, %v459_v30  ;;  %v1972_v34 = vadd.f32 %v1636_v1, %v619_v32 }
 0x107   :  { %882 = vrot.lane.b32.xlu1 %v1758_v46, %s1353_s6  ;;  %880 = vrot.lane.b32.xlu0 %v1764_v49, %s1353_s6  ;;  %691 = vst.msk [vmem:[%s2417_s3 + $0x168] sm:$0xff] %vm86_vm1, %v1963_v29  ;;  %723 = vst.msk [vmem:[%s2417_s3 + $0x368] sm:$0xff] %vm86_vm1, %v1966_v31 }
 0x108   :  { %690 = vst.msk [vmem:[%s2417_s3 + $0x160] sm:$0xff] %vm86_vm1, %v1969_v33  ;;  %722 = vst.msk [vmem:[%s2417_s3 + $0x360] sm:$0xff] %vm86_vm1, %v1972_v34  ;;  %v1292_v35 = vpop.f32.mrb[24].mxu0  ;;  %v1340_v36 = vpop.f32.mrb[24].mxu1 }
 0x109   :  { %v1999_v37 = vadd.f32 %v1292_v35, %v1636_v1  ;;  %v469_v38 = vpop.f32.mrb[25].mxu0  ;;  %v2002_v39 = vadd.f32 %v1340_v36, %v1636_v1  ;;  %v629_v40 = vpop.f32.mrb[25].mxu1 }
 0x10a   :  { %v2005_v41 = vadd.f32 %v1636_v1, %v469_v38  ;;  %v2008_v42 = vadd.f32 %v1636_v1, %v629_v40 }
 0x10b   :  { %822 = vrot.lane.b32.xlu1 %v1789_v52, %s1353_s6  ;;  %820 = vrot.lane.b32.xlu0 %v1795_v56, %s1353_s6  ;;  %693 = vst.msk [vmem:[%s2417_s3 + $0x188] sm:$0xff] %vm86_vm1, %v1999_v37  ;;  %725 = vst.msk [vmem:[%s2417_s3 + $0x388] sm:$0xff] %vm86_vm1, %v2002_v39 }
 0x10c   :  { %692 = vst.msk [vmem:[%s2417_s3 + $0x180] sm:$0xff] %vm86_vm1, %v2005_v41  ;;  %724 = vst.msk [vmem:[%s2417_s3 + $0x380] sm:$0xff] %vm86_vm1, %v2008_v42  ;;  %v1295_v43 = vpop.f32.mrb[26].mxu0  ;;  %v1343_v44 = vpop.f32.mrb[26].mxu1 }
 0x10d   :  { %v485_v45 = vadd.f32 %v1295_v43, %v1636_v1  ;;  %v479_v46 = vpop.f32.mrb[27].mxu0  ;;  %v645_v47 = vadd.f32 %v1343_v44, %v1636_v1  ;;  %v639_v48 = vpop.f32.mrb[27].mxu1 }
 0x10e   :  { %v480_v49 = vadd.f32 %v1636_v1, %v479_v46  ;;  %v640_v50 = vadd.f32 %v1636_v1, %v639_v48 }
 0x10f   :  { %886 = vrot.lane.b32.xlu1 %v1792_v54, %s1353_s6  ;;  %884 = vrot.lane.b32.xlu0 %v1798_v57, %s1353_s6  ;;  %695 = vst.msk [vmem:[%s2417_s3 + $0x1a8] sm:$0xff] %vm86_vm1, %v485_v45  ;;  %727 = vst.msk [vmem:[%s2417_s3 + $0x3a8] sm:$0xff] %vm86_vm1, %v645_v47 }
 0x110   :  { %694 = vst.msk [vmem:[%s2417_s3 + $0x1a0] sm:$0xff] %vm86_vm1, %v480_v49  ;;  %726 = vst.msk [vmem:[%s2417_s3 + $0x3a0] sm:$0xff] %vm86_vm1, %v640_v50  ;;  %v1298_v51 = vpop.f32.mrb[28].mxu0  ;;  %v1346_v52 = vpop.f32.mrb[28].mxu1 }
 0x111   :  { %v495_v53 = vadd.f32 %v1298_v51, %v1636_v1  ;;  %v489_v54 = vpop.f32.mrb[29].mxu0  ;;  %v655_v55 = vadd.f32 %v1346_v52, %v1636_v1  ;;  %v649_v56 = vpop.f32.mrb[29].mxu1 }
 0x112   :  { %v490_v57 = vadd.f32 %v1636_v1, %v489_v54  ;;  %v650_v58 = vadd.f32 %v1636_v1, %v649_v56 }
 0x113   :  { %826 = vrot.lane.b32.xlu1 %v1823_v60, %s1353_s6  ;;  %824 = vrot.lane.b32.xlu0 %v1829_v0, %s1353_s6  ;;  %697 = vst.msk [vmem:[%s2417_s3 + $0x1c8] sm:$0xff] %vm86_vm1, %v495_v53  ;;  %729 = vst.msk [vmem:[%s2417_s3 + $0x3c8] sm:$0xff] %vm86_vm1, %v655_v55 }
 0x114   :  { %696 = vst.msk [vmem:[%s2417_s3 + $0x1c0] sm:$0xff] %vm86_vm1, %v490_v57  ;;  %728 = vst.msk [vmem:[%s2417_s3 + $0x3c0] sm:$0xff] %vm86_vm1, %v650_v58  ;;  %v1301_v59 = vpop.f32.mrb[30].mxu0  ;;  %v1349_v60 = vpop.f32.mrb[30].mxu1 }
 0x115   :  { %v505_v61 = vadd.f32 %v1301_v59, %v1636_v1  ;;  %v499_v63 = vpop.f32.mrb[31].mxu0  ;;  %v665_v0 = vadd.f32 %v1349_v60, %v1636_v1  ;;  %v659_v3 = vpop.f32.mrb[31].mxu1 }
 0x116   :  { %v500_v4 = vadd.f32 %v1636_v1, %v499_v63  ;;  %v660_v6 = vadd.f32 %v1636_v1, %v659_v3 }
 0x117   :  { %890 = vrot.lane.b32.xlu1 %v1826_v62, %s1353_s6  ;;  %888 = vrot.lane.b32.xlu0 %v1832_v2, %s1353_s6  ;;  %699 = vst.msk [vmem:[%s2417_s3 + $0x1e8] sm:$0xff] %vm86_vm1, %v505_v61  ;;  %731 = vst.msk [vmem:[%s2417_s3 + $0x3e8] sm:$0xff] %vm86_vm1, %v665_v0 }
 0x118   :  { %698 = vst.msk [vmem:[%s2417_s3 + $0x1e0] sm:$0xff] %vm86_vm1, %v500_v4  ;;  %730 = vst.msk [vmem:[%s2417_s3 + $0x3e0] sm:$0xff] %vm86_vm1, %v660_v6 }
 0x11b   :  { %830 = vrot.lane.b32.xlu1 %v1857_v5, %s1353_s6  ;;  %828 = vrot.lane.b32.xlu0 %v1863_v9, %s1353_s6 }
 0x11f   :  { %894 = vrot.lane.b32.xlu1 %v1860_v7, %s1353_s6  ;;  %892 = vrot.lane.b32.xlu0 %v1866_v10, %s1353_s6 }
 0x123   :  { %834 = vrot.lane.b32.xlu1 %v1891_v13, %s1353_s6  ;;  %832 = vrot.lane.b32.xlu0 %v1897_v17, %s1353_s6 }
 0x127   :  { %898 = vrot.lane.b32.xlu1 %v1894_v15, %s1353_s6  ;;  %896 = vrot.lane.b32.xlu0 %v1900_v18, %s1353_s6 }
 0x12b   :  { %838 = vrot.lane.b32.xlu1 %v1927_v21, %s1353_s6  ;;  %836 = vrot.lane.b32.xlu0 %v1933_v25, %s1353_s6 }
 0x12f   :  { %902 = vrot.lane.b32.xlu1 %v1930_v23, %s1353_s6  ;;  %900 = vrot.lane.b32.xlu0 %v1936_v26, %s1353_s6 }
 0x133   :  { %842 = vrot.lane.b32.xlu1 %v1963_v29, %s1353_s6  ;;  %840 = vrot.lane.b32.xlu0 %v1969_v33, %s1353_s6 }
 0x137   :  { %906 = vrot.lane.b32.xlu1 %v1966_v31, %s1353_s6  ;;  %904 = vrot.lane.b32.xlu0 %v1972_v34, %s1353_s6 }
 0x13b   :  { %846 = vrot.lane.b32.xlu1 %v1999_v37, %s1353_s6  ;;  %844 = vrot.lane.b32.xlu0 %v2005_v41, %s1353_s6 }
 0x13f   :  { %910 = vrot.lane.b32.xlu1 %v2002_v39, %s1353_s6  ;;  %908 = vrot.lane.b32.xlu0 %v2008_v42, %s1353_s6 }
 0x143   :  { %850 = vrot.lane.b32.xlu1 %v485_v45, %s1353_s6  ;;  %848 = vrot.lane.b32.xlu0 %v480_v49, %s1353_s6 }
 0x147   :  { %914 = vrot.lane.b32.xlu1 %v645_v47, %s1353_s6  ;;  %912 = vrot.lane.b32.xlu0 %v640_v50, %s1353_s6 }
 0x14b   :  { %854 = vrot.lane.b32.xlu1 %v495_v53, %s1353_s6  ;;  %852 = vrot.lane.b32.xlu0 %v490_v57, %s1353_s6 }
 0x14d   :  { %v863_v1 = vpop.permute.xlu1 %862  ;;  %v799_v62 = vpop.permute.xlu0 %798 }
 0x14e   :  { %1156 = vst.msk [vmem:[%s2417_s3 + $0x218] sm:$0xff] %vm86_vm1, %v863_v1  ;;  %1124 = vst.msk [vmem:[%s2417_s3 + $0x18] sm:$0xff] %vm86_vm1, %v799_v62 }
 0x14f   :  { %918 = vrot.lane.b32.xlu1 %v655_v55, %s1353_s6  ;;  %916 = vrot.lane.b32.xlu0 %v650_v58, %s1353_s6 }
 0x151   :  { %v803_v2 = vpop.permute.xlu1 %802  ;;  %v797_v5 = vpop.permute.xlu0 %796 }
 0x152   :  { %1126 = vst.msk [vmem:[%s2417_s3 + $0x38] sm:$0xff] %vm86_vm1, %v803_v2  ;;  %1123 = vst.msk [vmem:[%s2417_s3 + $0x10] sm:$0xff] %vm86_vm1, %v797_v5 }
 0x153   :  { %858 = vrot.lane.b32.xlu1 %v505_v61, %s1353_s6  ;;  %856 = vrot.lane.b32.xlu0 %v500_v4, %s1353_s6 }
 0x155   :  { %v867_v7 = vpop.permute.xlu1 %866  ;;  %v861_v8 = vpop.permute.xlu0 %860 }
 0x156   :  { %1158 = vst.msk [vmem:[%s2417_s3 + $0x238] sm:$0xff] %vm86_vm1, %v867_v7  ;;  %1155 = vst.msk [vmem:[%s2417_s3 + $0x210] sm:$0xff] %vm86_vm1, %v861_v8 }
 0x157   :  { %922 = vrot.lane.b32.xlu1 %v665_v0, %s1353_s6  ;;  %920 = vrot.lane.b32.xlu0 %v660_v6, %s1353_s6 }
 0x159   :  { %v801_v9 = vpop.permute.xlu1 %800  ;;  %v865_v10 = vpop.permute.xlu0 %864 }
 0x15a   :  { %1125 = vst.msk [vmem:[%s2417_s3 + $0x30] sm:$0xff] %vm86_vm1, %v801_v9  ;;  %1157 = vst.msk [vmem:[%s2417_s3 + $0x230] sm:$0xff] %vm86_vm1, %v865_v10 }
 0x15d   :  { %v807_v11 = vpop.permute.xlu1 %806  ;;  %v805_v12 = vpop.permute.xlu0 %804 }
 0x15e   :  { %1128 = vst.msk [vmem:[%s2417_s3 + $0x58] sm:$0xff] %vm86_vm1, %v807_v11  ;;  %1127 = vst.msk [vmem:[%s2417_s3 + $0x50] sm:$0xff] %vm86_vm1, %v805_v12 }
 0x161   :  { %v871_v13 = vpop.permute.xlu1 %870  ;;  %v869_v14 = vpop.permute.xlu0 %868 }
 0x162   :  { %1160 = vst.msk [vmem:[%s2417_s3 + $0x258] sm:$0xff] %vm86_vm1, %v871_v13  ;;  %1159 = vst.msk [vmem:[%s2417_s3 + $0x250] sm:$0xff] %vm86_vm1, %v869_v14 }
 0x165   :  { %v811_v15 = vpop.permute.xlu1 %810  ;;  %v809_v16 = vpop.permute.xlu0 %808 }
 0x166   :  { %1130 = vst.msk [vmem:[%s2417_s3 + $0x78] sm:$0xff] %vm86_vm1, %v811_v15  ;;  %1129 = vst.msk [vmem:[%s2417_s3 + $0x70] sm:$0xff] %vm86_vm1, %v809_v16 }
 0x169   :  { %v875_v17 = vpop.permute.xlu1 %874  ;;  %v873_v18 = vpop.permute.xlu0 %872 }
 0x16a   :  { %1162 = vst.msk [vmem:[%s2417_s3 + $0x278] sm:$0xff] %vm86_vm1, %v875_v17  ;;  %1161 = vst.msk [vmem:[%s2417_s3 + $0x270] sm:$0xff] %vm86_vm1, %v873_v18 }
 0x16d   :  { %v815_v19 = vpop.permute.xlu1 %814  ;;  %v813_v20 = vpop.permute.xlu0 %812 }
 0x16e   :  { %1132 = vst.msk [vmem:[%s2417_s3 + $0x98] sm:$0xff] %vm86_vm1, %v815_v19  ;;  %1131 = vst.msk [vmem:[%s2417_s3 + $0x90] sm:$0xff] %vm86_vm1, %v813_v20 }
 0x171   :  { %v879_v21 = vpop.permute.xlu1 %878  ;;  %v877_v22 = vpop.permute.xlu0 %876 }
 0x172   :  { %1164 = vst.msk [vmem:[%s2417_s3 + $0x298] sm:$0xff] %vm86_vm1, %v879_v21  ;;  %1163 = vst.msk [vmem:[%s2417_s3 + $0x290] sm:$0xff] %vm86_vm1, %v877_v22 }
 0x175   :  { %v819_v23 = vpop.permute.xlu1 %818  ;;  %v817_v24 = vpop.permute.xlu0 %816 }
 0x176   :  { %1134 = vst.msk [vmem:[%s2417_s3 + $0xb8] sm:$0xff] %vm86_vm1, %v819_v23  ;;  %1133 = vst.msk [vmem:[%s2417_s3 + $0xb0] sm:$0xff] %vm86_vm1, %v817_v24 }
 0x179   :  { %v883_v25 = vpop.permute.xlu1 %882  ;;  %v881_v26 = vpop.permute.xlu0 %880 }
 0x17a   :  { %1166 = vst.msk [vmem:[%s2417_s3 + $0x2b8] sm:$0xff] %vm86_vm1, %v883_v25  ;;  %1165 = vst.msk [vmem:[%s2417_s3 + $0x2b0] sm:$0xff] %vm86_vm1, %v881_v26 }
 0x17d   :  { %v823_v27 = vpop.permute.xlu1 %822  ;;  %v821_v28 = vpop.permute.xlu0 %820 }
 0x17e   :  { %1136 = vst.msk [vmem:[%s2417_s3 + $0xd8] sm:$0xff] %vm86_vm1, %v823_v27  ;;  %1135 = vst.msk [vmem:[%s2417_s3 + $0xd0] sm:$0xff] %vm86_vm1, %v821_v28 }
 0x181   :  { %v887_v29 = vpop.permute.xlu1 %886  ;;  %v885_v30 = vpop.permute.xlu0 %884 }
 0x182   :  { %1168 = vst.msk [vmem:[%s2417_s3 + $0x2d8] sm:$0xff] %vm86_vm1, %v887_v29  ;;  %1167 = vst.msk [vmem:[%s2417_s3 + $0x2d0] sm:$0xff] %vm86_vm1, %v885_v30 }
 0x185   :  { %v827_v31 = vpop.permute.xlu1 %826  ;;  %v825_v32 = vpop.permute.xlu0 %824 }
 0x186   :  { %1138 = vst.msk [vmem:[%s2417_s3 + $0xf8] sm:$0xff] %vm86_vm1, %v827_v31  ;;  %1137 = vst.msk [vmem:[%s2417_s3 + $0xf0] sm:$0xff] %vm86_vm1, %v825_v32 }
 0x189   :  { %v891_v33 = vpop.permute.xlu1 %890  ;;  %v889_v34 = vpop.permute.xlu0 %888 }
 0x18a   :  { %1170 = vst.msk [vmem:[%s2417_s3 + $0x2f8] sm:$0xff] %vm86_vm1, %v891_v33  ;;  %1169 = vst.msk [vmem:[%s2417_s3 + $0x2f0] sm:$0xff] %vm86_vm1, %v889_v34 }
 0x18d   :  { %v831_v35 = vpop.permute.xlu1 %830  ;;  %v829_v36 = vpop.permute.xlu0 %828 }
 0x18e   :  { %1140 = vst.msk [vmem:[%s2417_s3 + $0x118] sm:$0xff] %vm86_vm1, %v831_v35  ;;  %1139 = vst.msk [vmem:[%s2417_s3 + $0x110] sm:$0xff] %vm86_vm1, %v829_v36 }
 0x191   :  { %v895_v37 = vpop.permute.xlu1 %894  ;;  %v893_v38 = vpop.permute.xlu0 %892 }
 0x192   :  { %1172 = vst.msk [vmem:[%s2417_s3 + $0x318] sm:$0xff] %vm86_vm1, %v895_v37  ;;  %1171 = vst.msk [vmem:[%s2417_s3 + $0x310] sm:$0xff] %vm86_vm1, %v893_v38 }
 0x195   :  { %v835_v39 = vpop.permute.xlu1 %834  ;;  %v833_v40 = vpop.permute.xlu0 %832 }
 0x196   :  { %1142 = vst.msk [vmem:[%s2417_s3 + $0x138] sm:$0xff] %vm86_vm1, %v835_v39  ;;  %1141 = vst.msk [vmem:[%s2417_s3 + $0x130] sm:$0xff] %vm86_vm1, %v833_v40 }
 0x199   :  { %v899_v41 = vpop.permute.xlu1 %898  ;;  %v897_v42 = vpop.permute.xlu0 %896 }
 0x19a   :  { %1174 = vst.msk [vmem:[%s2417_s3 + $0x338] sm:$0xff] %vm86_vm1, %v899_v41  ;;  %1173 = vst.msk [vmem:[%s2417_s3 + $0x330] sm:$0xff] %vm86_vm1, %v897_v42 }
 0x19d   :  { %v839_v43 = vpop.permute.xlu1 %838  ;;  %v837_v44 = vpop.permute.xlu0 %836 }
 0x19e   :  { %1144 = vst.msk [vmem:[%s2417_s3 + $0x158] sm:$0xff] %vm86_vm1, %v839_v43  ;;  %1143 = vst.msk [vmem:[%s2417_s3 + $0x150] sm:$0xff] %vm86_vm1, %v837_v44 }
 0x1a1   :  { %v903_v45 = vpop.permute.xlu1 %902  ;;  %v901_v46 = vpop.permute.xlu0 %900 }
 0x1a2   :  { %1176 = vst.msk [vmem:[%s2417_s3 + $0x358] sm:$0xff] %vm86_vm1, %v903_v45  ;;  %1175 = vst.msk [vmem:[%s2417_s3 + $0x350] sm:$0xff] %vm86_vm1, %v901_v46 }
 0x1a5   :  { %v843_v47 = vpop.permute.xlu1 %842  ;;  %v841_v48 = vpop.permute.xlu0 %840 }
 0x1a6   :  { %1146 = vst.msk [vmem:[%s2417_s3 + $0x178] sm:$0xff] %vm86_vm1, %v843_v47  ;;  %1145 = vst.msk [vmem:[%s2417_s3 + $0x170] sm:$0xff] %vm86_vm1, %v841_v48 }
 0x1a9   :  { %v907_v49 = vpop.permute.xlu1 %906  ;;  %v905_v50 = vpop.permute.xlu0 %904 }
 0x1aa   :  { %1178 = vst.msk [vmem:[%s2417_s3 + $0x378] sm:$0xff] %vm86_vm1, %v907_v49  ;;  %1177 = vst.msk [vmem:[%s2417_s3 + $0x370] sm:$0xff] %vm86_vm1, %v905_v50 }
 0x1ad   :  { %v847_v51 = vpop.permute.xlu1 %846  ;;  %v845_v52 = vpop.permute.xlu0 %844 }
 0x1ae   :  { %1148 = vst.msk [vmem:[%s2417_s3 + $0x198] sm:$0xff] %vm86_vm1, %v847_v51  ;;  %1147 = vst.msk [vmem:[%s2417_s3 + $0x190] sm:$0xff] %vm86_vm1, %v845_v52 }
 0x1b1   :  { %v911_v53 = vpop.permute.xlu1 %910  ;;  %v909_v54 = vpop.permute.xlu0 %908 }
 0x1b2   :  { %1180 = vst.msk [vmem:[%s2417_s3 + $0x398] sm:$0xff] %vm86_vm1, %v911_v53  ;;  %1179 = vst.msk [vmem:[%s2417_s3 + $0x390] sm:$0xff] %vm86_vm1, %v909_v54 }
 0x1b5   :  { %v851_v55 = vpop.permute.xlu1 %850  ;;  %v849_v56 = vpop.permute.xlu0 %848 }
 0x1b6   :  { %1150 = vst.msk [vmem:[%s2417_s3 + $0x1b8] sm:$0xff] %vm86_vm1, %v851_v55  ;;  %1149 = vst.msk [vmem:[%s2417_s3 + $0x1b0] sm:$0xff] %vm86_vm1, %v849_v56 }
 0x1b9   :  { %v915_v57 = vpop.permute.xlu1 %914  ;;  %v913_v58 = vpop.permute.xlu0 %912 }
 0x1ba   :  { %1182 = vst.msk [vmem:[%s2417_s3 + $0x3b8] sm:$0xff] %vm86_vm1, %v915_v57  ;;  %1181 = vst.msk [vmem:[%s2417_s3 + $0x3b0] sm:$0xff] %vm86_vm1, %v913_v58 }
 0x1bd   :  { %v855_v59 = vpop.permute.xlu1 %854  ;;  %v853_v60 = vpop.permute.xlu0 %852 }
 0x1be   :  { %1152 = vst.msk [vmem:[%s2417_s3 + $0x1d8] sm:$0xff] %vm86_vm1, %v855_v59  ;;  %1151 = vst.msk [vmem:[%s2417_s3 + $0x1d0] sm:$0xff] %vm86_vm1, %v853_v60 }
 0x1c1   :  { %v919_v61 = vpop.permute.xlu1 %918  ;;  %v917_v63 = vpop.permute.xlu0 %916 }
 0x1c2   :  { %1184 = vst.msk [vmem:[%s2417_s3 + $0x3d8] sm:$0xff] %vm86_vm1, %v919_v61  ;;  %1183 = vst.msk [vmem:[%s2417_s3 + $0x3d0] sm:$0xff] %vm86_vm1, %v917_v63 }
 0x1c5   :  { %v859_v0 = vpop.permute.xlu1 %858  ;;  %v857_v3 = vpop.permute.xlu0 %856 }
 0x1c6   :  { %1154 = vst.msk [vmem:[%s2417_s3 + $0x1f8] sm:$0xff] %vm86_vm1, %v859_v0  ;;  %1153 = vst.msk [vmem:[%s2417_s3 + $0x1f0] sm:$0xff] %vm86_vm1, %v857_v3 }
 0x1c9   :  { %v923_v4 = vpop.permute.xlu1 %922  ;;  %v921_v6 = vpop.permute.xlu0 %920 }
 0x1ca   :  { %1186 = vst.msk [vmem:[%s2417_s3 + $0x3f8] sm:$0xff] %vm86_vm1, %v923_v4  ;;  %1185 = vst.msk [vmem:[%s2417_s3 + $0x3f0] sm:$0xff] %vm86_vm1, %v921_v6 }

</bundles_post_ra>
